<compile_context>
chip_gen: v7x
topology: tpu7x:2x2x1
jax: 0.10.0
libtpu: 0.0.40
codegen_flags: <defaults>
</compile_context>

<pallas_src>
import functools

import jax
import jax.numpy as jnp
from jax import lax
from jax.experimental import pallas as pl
from jax.experimental.pallas import tpu as pltpu

LANE = 128


def _wbce_partial_kernel(pred_ref, gt_ref, out_ref, *, epsilon, numel,
                         block_rows, need_counts, has_tail):
    i = pl.program_id(0)

    def emit(masked):
        pred = pred_ref[...].astype(jnp.float32)
        gt = gt_ref[...].astype(jnp.float32)
        if masked:
            r = lax.broadcasted_iota(jnp.int32, pred.shape, 0)
            c = lax.broadcasted_iota(jnp.int32, pred.shape, 1)
            flat = (i * block_rows + r) * LANE + c
            valid = flat < numel
            # Clamp BEFORE the log so out-of-bounds garbage never produces
            # NaN/Inf; gt -> 0.5 also makes the ==1 / ==0 counts vanish for
            # padded elements.
            pred = jnp.where(valid, pred, 0.5)
            gt = jnp.where(valid, gt, 0.5)
        sp = gt * jnp.log(pred + epsilon)
        sn = (1.0 - gt) * jnp.log(1.0 - pred + epsilon)
        if masked:
            sp = jnp.where(valid, sp, 0.0)
            sn = jnp.where(valid, sn, 0.0)
        # Reduce only over the sublane axis -> lane-dense (1, 128) partials.
        rows = [jnp.sum(sp, axis=0, keepdims=True),
                jnp.sum(sn, axis=0, keepdims=True)]
        if need_counts:
            pos = (gt == 1.0).astype(jnp.float32)
            neg = (gt == 0.0).astype(jnp.float32)
            rows.append(jnp.sum(pos, axis=0, keepdims=True))
            rows.append(jnp.sum(neg, axis=0, keepdims=True))
        out_ref[...] = jnp.concatenate(rows, axis=0)[None]

    if has_tail:
        last = pl.num_programs(0) - 1

        @pl.when(i != last)
        def _():
            emit(False)

        @pl.when(i == last)
        def _():
            emit(True)
    else:
        emit(False)


def weighted_bce_loss(prediction, ground_truth, epsilon=1e-7,
                      negative_weight=None, positive_weight=None,
                      block_rows=1024):
    """Pallas TPU implementation of WeightedBCELoss.forward (returns scalar)."""
    numel = int(prediction.size)
    need_counts = (negative_weight is None) or (positive_weight is None)

    # Flatten without changing dtype (kernel casts to f32 after the load).
    pred_flat = prediction.reshape(-1)
    gt_flat = ground_truth.reshape(-1)

    # Sublane granularity: 8 rows for 32-bit dtypes, 16 for bf16, 32 for 8-bit.
    min_itemsize = min(jnp.dtype(prediction.dtype).itemsize,
                       jnp.dtype(ground_truth.dtype).itemsize)
    sub = max(8, 32 // max(min_itemsize, 1))
    min_chunk = sub * LANE

    padded = pl.cdiv(numel, min_chunk) * min_chunk
    if padded != numel:
        # Pads at most one sub-tile; common shapes divide evenly and skip this.
        pred_flat = jnp.pad(pred_flat, (0, padded - numel))
        gt_flat = jnp.pad(gt_flat, (0, padded - numel))
    total_rows = padded // LANE

    block_rows = min(int(block_rows), total_rows)
    block_rows = max(sub, (block_rows // sub) * sub)

    grid = pl.cdiv(total_rows, block_rows)
    has_tail = (grid * block_rows * LANE) > numel
    n_rows_out = 4 if need_counts else 2

    pred2 = pred_flat.reshape(total_rows, LANE)
    gt2 = gt_flat.reshape(total_rows, LANE)

    kernel = functools.partial(
        _wbce_partial_kernel,
        epsilon=float(epsilon),
        numel=numel,
        block_rows=block_rows,
        need_counts=need_counts,
        has_tail=has_tail,
    )

    partials = pl.pallas_call(
        kernel,
        out_shape=jax.ShapeDtypeStruct((grid, n_rows_out, LANE), jnp.float32),
        grid_spec=pltpu.PrefetchScalarGridSpec(
            num_scalar_prefetch=0,
            grid=(grid,),
            in_specs=[
                pl.BlockSpec((block_rows, LANE), lambda i: (i, 0)),
                pl.BlockSpec((block_rows, LANE), lambda i: (i, 0)),
            ],
            out_specs=pl.BlockSpec((1, n_rows_out, LANE), lambda i: (i, 0, 0)),
        ),
        compiler_params=pltpu.CompilerParams(
            dimension_semantics=("parallel",)),
    )(pred2, gt2)

    # Tiny epilogue in plain JAX: cross-block + cross-lane reduce, weighting.
    sums = jnp.sum(partials, axis=(0, 2))          # (n_rows_out,)
    sp_sum, sn_sum = sums[0], sums[1]
    if need_counts:
        pos_cnt, neg_cnt = sums[2], sums[3]
        total = pos_cnt + neg_cnt
        w_p = neg_cnt / total
        w_n = pos_cnt / total
    else:
        w_p = jnp.float32(positive_weight)
        w_n = jnp.float32(negative_weight)
    # loss = -w_p*mean(gt*log(p+eps)) - w_n*mean((1-gt)*log(1-p+eps))
    return -(w_p * sp_sum + w_n * sn_sum) / jnp.float32(numel)


def _reference_loss(pred, gt, epsilon=1e-7, w_n=None, w_p=None):
    pred = pred.astype(jnp.float32)
    gt = gt.astype(jnp.float32)
    if w_n is None or w_p is None:
        pos = jnp.sum((gt == 1.0).astype(jnp.float32))
        neg = jnp.sum((gt == 0.0).astype(jnp.float32))
        total = pos + neg
        w_p = neg / total
        w_n = pos / total
    loss_pos = -w_p * jnp.mean(gt * jnp.log(pred + epsilon))
    loss_neg = -w_n * jnp.mean((1.0 - gt) * jnp.log(1.0 - pred + epsilon))
    return loss_pos + loss_neg


if __name__ == "__main__":
    key = jax.random.PRNGKey(0)
    k1, k2, k3, k4 = jax.random.split(key, 4)

    # NCHW: batch=2, channels=4, spatial=16x16 (numel divides the tile -> no tail)
    shape = (2, 4, 16, 16)
    prediction = jax.nn.sigmoid(jax.random.normal(k1, shape, jnp.float32))
    ground_truth = jax.random.bernoulli(k2, 0.3, shape).astype(jnp.float32)

    loss = jax.block_until_ready(weighted_bce_loss(prediction, ground_truth))
    ref = jax.block_until_ready(_reference_loss(prediction, ground_truth))
    assert jnp.allclose(loss, ref, rtol=1e-5, atol=1e-6), (loss, ref)

    # Fixed-weight path (skips in-kernel class counting).
    loss_w = jax.block_until_ready(
        weighted_bce_loss(prediction, ground_truth,
                          negative_weight=0.25, positive_weight=0.75))
    ref_w = jax.block_until_ready(
        _reference_loss(prediction, ground_truth, w_n=0.25, w_p=0.75))
    assert jnp.allclose(loss_w, ref_w, rtol=1e-5, atol=1e-6), (loss_w, ref_w)

    # Ragged shape exercising the in-kernel tail mask (numel = 600).
    shape2 = (2, 3, 10, 10)
    pred2 = jax.nn.sigmoid(jax.random.normal(k3, shape2, jnp.float32))
    gt2 = jax.random.bernoulli(k4, 0.4, shape2).astype(jnp.float32)
    loss2 = jax.block_until_ready(weighted_bce_loss(pred2, gt2))
    ref2 = jax.block_until_ready(_reference_loss(pred2, gt2))
    assert jnp.allclose(loss2, ref2, rtol=1e-5, atol=1e-6), (loss2, ref2)

    print("KERNEL_OK")
</pallas_src>

<mosaic_0001>
module attributes {stable_mosaic.version = 11 : i64} {
  func.func @_wbce_partial_kernel(%arg0: i32, %arg1: memref<16x128xf32, #tpu.memory_space<vmem>>, %arg2: memref<16x128xf32, #tpu.memory_space<vmem>>, %arg3: memref<1x4x128xf32, #tpu.memory_space<vmem>>) attributes {dimension_semantics = [#tpu.dimension_semantics<parallel>], iteration_bounds = array<i64: 1>, scalar_prefetch = 0 : i64, scratch_operands = 0 : i64, tpu.core_type = #tpu.core_type<tc>, window_params = [{transform_indices = @transform_0, window_bounds = array<i64: 16, 128>}, {transform_indices = @transform_1, window_bounds = array<i64: 16, 128>}, {transform_indices = @transform_2, window_bounds = array<i64: 1, 4, 128>}]} {
    %c0 = arith.constant 0 : index
    %c0_0 = arith.constant 0 : index
    %0 = vector.load %arg1[%c0, %c0_0] : memref<16x128xf32, #tpu.memory_space<vmem>>, vector<16x128xf32>
    %c0_1 = arith.constant 0 : index
    %c0_2 = arith.constant 0 : index
    %1 = vector.load %arg2[%c0_1, %c0_2] : memref<16x128xf32, #tpu.memory_space<vmem>>, vector<16x128xf32>
    %cst = arith.constant 1.000000e-07 : f32
    %2 = vector.broadcast %cst : f32 to vector<16x128xf32>
    %3 = arith.addf %0, %2 : vector<16x128xf32>
    %4 = math.log %3 : vector<16x128xf32>
    %5 = arith.mulf %1, %4 : vector<16x128xf32>
    %cst_3 = arith.constant 1.000000e+00 : f32
    %6 = vector.broadcast %cst_3 : f32 to vector<16x128xf32>
    %7 = arith.subf %6, %1 : vector<16x128xf32>
    %cst_4 = arith.constant 1.000000e+00 : f32
    %8 = vector.broadcast %cst_4 : f32 to vector<16x128xf32>
    %9 = arith.subf %8, %0 : vector<16x128xf32>
    %cst_5 = arith.constant 1.000000e-07 : f32
    %10 = vector.broadcast %cst_5 : f32 to vector<16x128xf32>
    %11 = arith.addf %9, %10 : vector<16x128xf32>
    %12 = math.log %11 : vector<16x128xf32>
    %13 = arith.mulf %7, %12 : vector<16x128xf32>
    %cst_6 = arith.constant dense<0.000000e+00> : vector<128xf32>
    %14 = vector.multi_reduction <add>, %5, %cst_6 [0] : vector<16x128xf32> to vector<128xf32>
    %15 = vector.shape_cast %14 : vector<128xf32> to vector<1x128xf32>
    %cst_7 = arith.constant dense<0.000000e+00> : vector<128xf32>
    %16 = vector.multi_reduction <add>, %13, %cst_7 [0] : vector<16x128xf32> to vector<128xf32>
    %17 = vector.shape_cast %16 : vector<128xf32> to vector<1x128xf32>
    %cst_8 = arith.constant 1.000000e+00 : f32
    %18 = vector.broadcast %cst_8 : f32 to vector<16x128xf32>
    %19 = arith.cmpf oeq, %1, %18 : vector<16x128xf32>
    %20 = arith.extui %19 : vector<16x128xi1> to vector<16x128xi32>
    %21 = arith.sitofp %20 : vector<16x128xi32> to vector<16x128xf32>
    %cst_9 = arith.constant 0.000000e+00 : f32
    %22 = vector.broadcast %cst_9 : f32 to vector<16x128xf32>
    %23 = arith.cmpf oeq, %1, %22 : vector<16x128xf32>
    %24 = arith.extui %23 : vector<16x128xi1> to vector<16x128xi32>
    %25 = arith.sitofp %24 : vector<16x128xi32> to vector<16x128xf32>
    %cst_10 = arith.constant dense<0.000000e+00> : vector<128xf32>
    %26 = vector.multi_reduction <add>, %21, %cst_10 [0] : vector<16x128xf32> to vector<128xf32>
    %27 = vector.shape_cast %26 : vector<128xf32> to vector<1x128xf32>
    %cst_11 = arith.constant dense<0.000000e+00> : vector<128xf32>
    %28 = vector.multi_reduction <add>, %25, %cst_11 [0] : vector<16x128xf32> to vector<128xf32>
    %29 = vector.shape_cast %28 : vector<128xf32> to vector<1x128xf32>
    %30 = tpu.concatenate %15, %17, %27, %29 in 0 : vector<1x128xf32>, vector<1x128xf32>, vector<1x128xf32>, vector<1x128xf32> -> vector<4x128xf32>
    %31 = vector.shape_cast %30 : vector<4x128xf32> to vector<1x4x128xf32>
    %c0_12 = arith.constant 0 : index
    %c0_13 = arith.constant 0 : index
    %c0_14 = arith.constant 0 : index
    %32 = vector.load %arg3[%c0_12, %c0_13, %c0_14] : memref<1x4x128xf32, #tpu.memory_space<vmem>>, vector<1x4x128xf32>
    tpu.vector_store %arg3[%c0_12, %c0_13, %c0_14], %31 {strides = array<i32>} : memref<1x4x128xf32, #tpu.memory_space<vmem>>, vector<1x4x128xf32>,
    return
  }
  func.func @transform_0(%arg0: i32) -> (i32, i32) {
    %c0_i32 = arith.constant 0 : i32
    %c0_i32_0 = arith.constant 0 : i32
    return %arg0, %c0_i32 : i32, i32
  }
  func.func @transform_1(%arg0: i32) -> (i32, i32) {
    %c0_i32 = arith.constant 0 : i32
    %c0_i32_0 = arith.constant 0 : i32
    return %arg0, %c0_i32 : i32, i32
  }
  func.func @transform_2(%arg0: i32) -> (i32, i32, i32) {
    %c0_i32 = arith.constant 0 : i32
    %c0_i32_0 = arith.constant 0 : i32
    %c0_i32_1 = arith.constant 0 : i32
    return %arg0, %c0_i32, %c0_i32_0 : i32, i32, i32
  }
}

</mosaic_0001>

<bundles_post_ra>
// kernel: tpu_custom_call.1
= control target key start
LH: loop header
LB: loop body
LE: loop exit
PB: predicated region body
PF: predicated region fallthrough
CT: control target
= control target key end

     0   :  { %7 = vsyncpa [#allocation3], 0  ;;  %s274_s0 = inlined_call_operand.hbm [shape: f32[16,128], index: 0, kind: input, shape index: {}]   ;;  %s275_s1 = inlined_call_operand.hbm [shape: f32[16,128], index: 1, kind: input, shape index: {}]   ;;  %s276_s2 = inlined_call_operand.hbm [shape: f32[1,4,128], index: 2, kind: output, shape index: {}]  }
   0x1   :  { %8 = vsyncpa [#allocation6], 0 }
   0x2   :  { %9 = vsyncpa [#allocation4], 0  ;;  %s217_s9 = smov [#allocation2]   ;;  %s145_s13 = scalar_lea.hbm %s274_s0, 256 }
   0x3   :  { %s15_s10 = sshll.u32 %s217_s9, 4  ;;  %p146_p0 = scmp.ne.s32.totalorder %s274_s0, %s145_s13  ;;  %s16_s10 = int_to_ptr.vmem [resolvable:$true] %s15_s10 }
   0x4   :  { %p149_p1 = scmp.lt.u32.totalorder %s145_s13, %s274_s0 }
   0x6   :  { %p151_p2 = pnand %p149_p1, %p146_p0 }
   0x8   :  { %154 = shalt.err (!%p151_p2)
}
   0x9   :  { %s155_s18 = scalar_lea.vmem %s16_s10, 256  ;;  %p160_p4 = scmp.lt.s32.totalorder %s16_s10, %s16_s10 }
   0xa   :  { %p156_p3 = scmp.ne.s32.totalorder %s16_s10, %s155_s18  ;;  %p161_p5 = scmp.lt.s32.totalorder %s155_s18, %s155_s18 }
   0xc   :  { %p162_p6 = por %p161_p5, %p160_p4 }
   0xe   :  { %p163_p7 = pnand %p162_p6, %p156_p3 }
  0x10   :  { %166 = shalt.err (!%p163_p7)
}
  0x11   :  { %s218_s19 = smov 128   ;;  %s219_s20 = smov 8  }
  0x12   :  { %21 = dma.hbm_to_vmem [thread:$0]  %s274_s0, 256, %s16_s10, [#allocation3], %s218_s19, %s218_s19, %s219_s20  }
  0x13   :  { %s220_s23 = smov [#allocation5]   ;;  %s167_s27 = scalar_lea.hbm %s275_s1, 256 }
  0x14   :  { %s27_s24 = sshll.u32 %s220_s23, 4  ;;  %p168_p8 = scmp.ne.s32.totalorder %s275_s1, %s167_s27  ;;  %s28_s24 = int_to_ptr.vmem [resolvable:$true] %s27_s24 }
  0x15   :  { %p171_p9 = scmp.lt.u32.totalorder %s167_s27, %s275_s1 }
  0x17   :  { %p173_p10 = pnand %p171_p9, %p168_p8 }
  0x19   :  { %176 = shalt.err (!%p173_p10)
}
  0x1a   :  { %s177_s4 = scalar_lea.vmem %s28_s24, 256  ;;  %p182_p12 = scmp.lt.s32.totalorder %s28_s24, %s28_s24 }
  0x1b   :  { %p178_p11 = scmp.ne.s32.totalorder %s28_s24, %s177_s4  ;;  %p183_p13 = scmp.lt.s32.totalorder %s177_s4, %s177_s4 }
  0x1d   :  { %p184_p0 = por %p183_p13, %p182_p12 }
  0x1f   :  { %p185_p1 = pnand %p184_p0, %p178_p11 }
  0x21   :  { %188 = shalt.err (!%p185_p1)
}
  0x22   :  { %33 = dma.hbm_to_vmem [thread:$0]  %s275_s1, 256, %s28_s24, [#allocation6], %s218_s19, %s218_s19, %s219_s20  }
  0x23   :  { %211 = dma.done.wait [#allocation3], 256  }
  0x24   :  { %212 = vsyncadd [#allocation3], 4294967040 }
  0x25   :  { %213 = dma.done.wait [#allocation6], 256  }
  0x26   :  { %214 = vsyncadd [#allocation6], 4294967040  ;;  %v40_v0 = vld [vmem:[#allocation2] sm:$0xff]  ;;  %v41_v1 = vld [vmem:[#allocation2 + $0x8] sm:$0xff]  ;;  %v221_v10 = vmov 0.0   ;;  %vm104_vm4 = vcmask 1040384  }
  0x27   :  { %v44_v2 = vadd.f32 1e-07, %v40_v0  ;;  %v45_v3 = vadd.f32 1e-07, %v41_v1  ;;  %v42_v4 = vld [vmem:[#allocation5] sm:$0xff]  ;;  %v43_v5 = vld [vmem:[#allocation5 + $0x8] sm:$0xff] }
  0x28   :  { %v54_v6 = vsub.f32 1.0, %v40_v0  ;;  %v55_v7 = vsub.f32 1.0, %v41_v1  ;;  %vm78_vm0 = vcmp.eq.f32.partialorder %v42_v4, 1.0  ;;  %vm79_vm1 = vcmp.eq.f32.partialorder %v43_v5, 1.0  ;;  %s222_s1 = smov [#allocation7]  }
  0x29   :  { %137 = vlog2.f32 %v44_v2  ;;  %vm84_vm2 = vcmp.eq.f32.partialorder %v42_v4, 0.0  ;;  %vm85_vm3 = vcmp.eq.f32.partialorder %v43_v5, 0.0  ;;  %v127_v11 = vsel %vm78_vm0, 1.0, %v221_v10  ;;  %s117_s6 = sshll.u32 %s222_s1, 4  ;;  %s118_s6 = int_to_ptr.vmem [resolvable:$true] %s117_s6 }
  0x2a   :  { %139 = vlog2.f32 %v45_v3  ;;  %v56_v8 = vadd.f32 1e-07, %v54_v6  ;;  %v57_v9 = vadd.f32 1e-07, %v55_v7  ;;  %v128_v12 = vsel %vm79_vm1, 1.0, %v221_v10  ;;  %s189_s7 = scalar_lea.vmem %s118_s6, 64  ;;  %p194_p3 = scmp.lt.s32.totalorder %s118_s6, %s118_s6 }
  0x2b   :  { %v129_v13 = vsel %vm84_vm2, 1.0, %v221_v10  ;;  %v130_v14 = vsel %vm85_vm3, 1.0, %v221_v10  ;;  %v90_v15 = vadd.f32 %v128_v12, %v127_v11  ;;  %v52_v23 = vsub.f32 1.0, %v42_v4  ;;  %p190_p2 = scmp.ne.s32.totalorder %s118_s6, %s189_s7  ;;  %p195_p4 = scmp.lt.s32.totalorder %s189_s7, %s189_s7 }
  0x2c   :  { %141 = vlog2.f32 %v56_v8  ;;  %v97_v16 = vadd.f32 %v130_v14, %v129_v13  ;;  %v53_v26 = vsub.f32 1.0, %v43_v5  ;;  %vm106_vm5 = vcmask 1041408  }
  0x2d   :  { %143 = vlog2.f32 %v57_v9  ;;  %v91_v18 = vrot.slane %v90_v15, 4  ;;  %vm108_vm6 = vcmask 1042432   ;;  %p196_p5 = por %p195_p4, %p194_p3 }
  0x2e   :  { %v98_v21 = vrot.slane %v97_v16, 4 }
  0x2f   :  { %v92_v30 = vadd.f32 %v91_v18, %v90_v15  ;;  %p197_p6 = pnand %p196_p5, %p190_p2 }
  0x30   :  { %v99_v32 = vadd.f32 %v98_v21, %v97_v16 }
  0x31   :  { %v93_v37 = vrot.slane %v92_v30, 2 }
  0x32   :  { %v100_v39 = vrot.slane %v99_v32, 2 }
  0x33   :  { %v138_v17 = vpop.eup %137  ;;  %v94_v43 = vadd.f32 %v93_v37, %v92_v30 }
  0x34   :  { %v140_v19 = vpop.eup %139  ;;  %v47_v20 = vmul.f32 0.6931472, %v138_v17  ;;  %v101_v45 = vadd.f32 %v100_v39, %v99_v32 }
  0x35   :  { %v49_v22 = vmul.f32 0.6931472, %v140_v19  ;;  %v95_v49 = vrot.slane %v94_v43, 1 }
  0x36   :  { %v142_v24 = vpop.eup %141  ;;  %v50_v25 = vmul.f32 %v47_v20, %v42_v4  ;;  %v102_v51 = vrot.slane %v101_v45, 1 }
  0x37   :  { %v144_v27 = vpop.eup %143  ;;  %v51_v28 = vmul.f32 %v49_v22, %v43_v5  ;;  %v59_v29 = vmul.f32 0.6931472, %v142_v24  ;;  %v96_v54 = vadd.f32 %v95_v49, %v94_v43 }
  0x38   :  { %v61_v31 = vmul.f32 0.6931472, %v144_v27  ;;  %v103_v56 = vadd.f32 %v102_v51, %v101_v45 }
  0x39   :  { %v62_v33 = vmul.f32 %v59_v29, %v52_v23  ;;  %v64_v34 = vadd.f32 %v51_v28, %v50_v25 }
  0x3a   :  { %v63_v35 = vmul.f32 %v61_v31, %v53_v26 }
  0x3b   :  { %v65_v36 = vrot.slane %v64_v34, 4 }
  0x3c   :  { %v71_v38 = vadd.f32 %v63_v35, %v62_v33 }
  0x3d   :  { %v66_v40 = vadd.f32 %v65_v36, %v64_v34 }
  0x3e   :  { %v72_v41 = vrot.slane %v71_v38, 4 }
  0x3f   :  { %v67_v42 = vrot.slane %v66_v40, 2 }
  0x40   :  { %v73_v44 = vadd.f32 %v72_v41, %v71_v38 }
  0x41   :  { %v68_v46 = vadd.f32 %v67_v42, %v66_v40 }
  0x42   :  { %v74_v47 = vrot.slane %v73_v44, 2 }
  0x43   :  { %v69_v48 = vrot.slane %v68_v46, 1 }
  0x44   :  { %v75_v50 = vadd.f32 %v74_v47, %v73_v44 }
  0x45   :  { %v70_v52 = vadd.f32 %v69_v48, %v68_v46 }
  0x46   :  { %v76_v53 = vrot.slane %v75_v50, 1 }
  0x48   :  { %v77_v55 = vadd.f32 %v76_v53, %v75_v50 }
  0x4a   :  { %v105_v57 = vsel %vm104_vm4, %v70_v52, %v77_v55 }
  0x4b   :  { %v107_v58 = vsel %vm106_vm5, %v105_v57, %v96_v54 }
  0x4c   :  { %v109_v59 = vsel %vm108_vm6, %v107_v58, %v103_v56 }
  0x4d   :  { %110 = vst [vmem:[#allocation7] sm:$0xf] %v109_v59 }
  0x4e   :  { %200 = shalt.err (!%p197_p6)
}
  0x4f   :  { %s201_s10 = scalar_lea.hbm %s276_s2, 64 }
  0x50   :  { %p202_p7 = scmp.ne.s32.totalorder %s276_s2, %s201_s10  ;;  %p205_p8 = scmp.lt.u32.totalorder %s201_s10, %s276_s2 }
  0x52   :  { %p207_p9 = pnand %p205_p8, %p202_p7 }
  0x54   :  { %210 = shalt.err (!%p207_p9)
}
  0x55   :  { %120 = dma.vmem_to_hbm [thread:$0]  %s118_s6, 64, %s276_s2, [#allocation4]  }
  0x56   :  { %215 = dma.done.wait [#allocation4], 64  }
  0x57   :  { %216 = vsyncadd [#allocation4], 4294967232 }
  0x58   :  { %124 = vsyncpa [#allocation3], 1 }
  0x59   :  { %125 = vsyncpa [#allocation6], 1 }
  0x5a   :  { %126 = vsyncpa [#allocation4], 1 }

</bundles_post_ra>
